<compile_context>
chip_gen: v7x
topology: tpu7x:2x2x1
jax: 0.10.0
libtpu: 0.0.40
codegen_flags: <defaults>
</compile_context>

<pallas_src>
import functools

import jax
import jax.numpy as jnp
from jax.experimental import pallas as pl
from jax.experimental.pallas import tpu as pltpu

MATMUL_DTYPE = jnp.bfloat16   # MXU operand dtype; elementwise math stays f32.
SUBLANE = 8


def _round_up(x, m):
    return ((x + m - 1) // m) * m


def _nbytes(shape, dtype):
    n = 1
    for d in shape:
        n *= int(d)
    return n * jnp.dtype(dtype).itemsize


def cvae_kernel(x_ref, y_ref, eps_ref,
                we1x_ref, we1y_ref, be1_ref,
                we2_ref, be2_ref,
                wd1z_ref, wd1y_ref, bd1_ref,
                wd2_ref, bd2_ref,
                out_ref, *, latent_dim):
    f32 = jnp.float32
    c = MATMUL_DTYPE

    x = x_ref[...].astype(c)
    y = y_ref[...].astype(c)

    # ---- encoder layer 1: relu(cat(x, y) @ We1 + be1) with the concat folded
    #      into row-split weights (x @ We1x + y @ We1y).
    h1 = (jnp.dot(x, we1x_ref[...], preferred_element_type=f32)
          + jnp.dot(y, we1y_ref[...], preferred_element_type=f32)
          + be1_ref[...])
    h1 = jnp.maximum(h1, 0.0)

    # ---- encoder layer 2: one (hidden -> 2*latent) matmul; split the f32
    #      result into mean / log_var with static lane slices.
    enc = jnp.dot(h1.astype(c), we2_ref[...], preferred_element_type=f32) + be2_ref[...]
    mean = enc[:, :latent_dim]
    log_var = enc[:, latent_dim:]

    # ---- reparameterization (matches the torch spec: sigma = exp(log_var)).
    z = mean + jnp.exp(log_var) * eps_ref[...]

    # ---- decoder layer 1: relu(cat(z, y) @ Wd1 + bd1), concat folded again.
    h2 = (jnp.dot(z.astype(c), wd1z_ref[...], preferred_element_type=f32)
          + jnp.dot(y, wd1y_ref[...], preferred_element_type=f32)
          + bd1_ref[...])
    h2 = jnp.maximum(h2, 0.0)

    # ---- decoder layer 2 + Sigmoid.
    logits = jnp.dot(h2.astype(c), wd2_ref[...], preferred_element_type=f32) + bd2_ref[...]
    out_ref[...] = jax.nn.sigmoid(logits).astype(out_ref.dtype)


def cvae_forward(x, y, eps, params, *, tile_n=256, num_cores=1):
    """x: (N, input_dim) f32, y: (N, n_classes) f32 one-hot, eps: (N, latent) f32."""
    n, input_dim = x.shape
    n_classes = y.shape[1]
    latent_dim = eps.shape[1]
    output_dim = params["wd2"].shape[1]

    # --- batch tile selection -------------------------------------------------
    tile_n = min(int(tile_n), n)
    if num_cores > 1 and n >= num_cores * SUBLANE:
        # Keep the "parallel" grid a multiple of the TC count (v7x megacore).
        per_core = -(-n // num_cores)
        tile_n = min(tile_n, _round_up(per_core, SUBLANE))
    if tile_n < n:
        tile_n = max(SUBLANE, (tile_n // SUBLANE) * SUBLANE)   # (8,128) rule

    n_pad = _round_up(n, tile_n)
    if n_pad != n:
        pad = n_pad - n
        x = jnp.pad(x, ((0, pad), (0, 0)))
        y = jnp.pad(y, ((0, pad), (0, 0)))
        eps = jnp.pad(eps, ((0, pad), (0, 0)))
    grid = (n_pad // tile_n,)

    weight_names = ("we1x", "we1y", "be1", "we2", "be2",
                    "wd1z", "wd1y", "bd1", "wd2", "bd2")
    weights = [params[k] for k in weight_names]

    in_arrays = []
    in_specs = []
    block_bytes = 0

    # batch-tiled inputs (each DMA'd exactly once per tile)
    for arr, d in ((x, input_dim), (y, n_classes), (eps, latent_dim)):
        in_arrays.append(arr)
        in_specs.append(pl.BlockSpec((tile_n, d), lambda i: (i, 0)))
        block_bytes += _nbytes((tile_n, d), arr.dtype)
    # weights/biases: full-array blocks, same block every grid step (no re-DMA)
    for w in weights:
        in_arrays.append(w)
        in_specs.append(pl.BlockSpec(w.shape, lambda i: (0, 0)))
        block_bytes += _nbytes(w.shape, w.dtype)
    block_bytes += _nbytes((tile_n, output_dim), jnp.float32)   # output block

    # Footprint-based scoped-VMEM budget: double-buffered blocks + headroom,
    # capped at 48 MiB (inside v7x's 64 MiB physical VMEM; never a spill-forcing
    # clamp on v5e/v6e).
    vmem_limit = int(min(max(2 * block_bytes + (2 << 20), 4 << 20), 48 << 20))

    out = pl.pallas_call(
        functools.partial(cvae_kernel, latent_dim=latent_dim),
        out_shape=jax.ShapeDtypeStruct((n_pad, output_dim), jnp.float32),
        grid=grid,
        in_specs=in_specs,
        out_specs=pl.BlockSpec((tile_n, output_dim), lambda i: (i, 0)),
        compiler_params=pltpu.CompilerParams(
            dimension_semantics=("parallel",),
            vmem_limit_bytes=vmem_limit),
    )(*in_arrays)

    if n_pad != n:
        out = out[:n]
    return out


def init_params(key, input_dim, hidden_dim, latent_dim, n_classes):
    """PyTorch-style Linear init: U(-1/sqrt(fan_in), +1/sqrt(fan_in)).

    Weights stored (fan_in, fan_out) (transposed vs torch) and pre-cast to
    MATMUL_DTYPE; biases stay f32.  We1 is split row-wise into x/y halves and
    Wd1 into z/y halves so the kernel needs no concat.  We2 stays merged
    (mean/log_var are sliced in-kernel).  No output padding.
    """
    ks = jax.random.split(key, 4)

    def linear(k, fan_in, fan_out):
        kw, kb = jax.random.split(k)
        bound = 1.0 / (fan_in ** 0.5)
        w = jax.random.uniform(kw, (fan_in, fan_out), jnp.float32, -bound, bound)
        b = jax.random.uniform(kb, (1, fan_out), jnp.float32, -bound, bound)
        return w, b

    output_dim = input_dim
    we1, be1 = linear(ks[0], input_dim + n_classes, hidden_dim)
    we2, be2 = linear(ks[1], hidden_dim, 2 * latent_dim)
    wd1, bd1 = linear(ks[2], latent_dim + n_classes, hidden_dim)
    wd2, bd2 = linear(ks[3], hidden_dim, output_dim)

    c = MATMUL_DTYPE
    return dict(
        we1x=we1[:input_dim, :].astype(c),
        we1y=we1[input_dim:, :].astype(c), be1=be1,
        we2=we2.astype(c), be2=be2,
        wd1z=wd1[:latent_dim, :].astype(c),
        wd1y=wd1[latent_dim:, :].astype(c), bd1=bd1,
        wd2=wd2.astype(c), bd2=bd2,
    )


def cvae_ref(x, y, eps, p):
    """Pure-JAX reference with the same bf16-operand / f32-accumulate numerics."""
    c, f32 = MATMUL_DTYPE, jnp.float32
    latent_dim = eps.shape[1]
    xc, yc = x.astype(c), y.astype(c)
    h1 = jax.nn.relu(jnp.dot(xc, p["we1x"], preferred_element_type=f32)
                     + jnp.dot(yc, p["we1y"], preferred_element_type=f32) + p["be1"])
    enc = jnp.dot(h1.astype(c), p["we2"], preferred_element_type=f32) + p["be2"]
    mean, log_var = enc[:, :latent_dim], enc[:, latent_dim:]
    z = mean + jnp.exp(log_var) * eps
    h2 = jax.nn.relu(jnp.dot(z.astype(c), p["wd1z"], preferred_element_type=f32)
                     + jnp.dot(yc, p["wd1y"], preferred_element_type=f32) + p["bd1"])
    return jax.nn.sigmoid(jnp.dot(h2.astype(c), p["wd2"], preferred_element_type=f32)
                          + p["bd2"])


if __name__ == "__main__":
    key = jax.random.PRNGKey(0)
    kx, ky, keps, kp = jax.random.split(key, 4)

    batch, input_dim, hidden_dim, latent_dim, n_classes = 16, 16, 32, 8, 8
    x = jax.random.normal(kx, (batch, input_dim), jnp.float32)
    labels = jax.random.randint(ky, (batch,), 0, n_classes)
    y = jax.nn.one_hot(labels, n_classes, dtype=jnp.float32)
    eps = jax.random.normal(keps, (batch, latent_dim), jnp.float32)

    params = init_params(kp, input_dim, hidden_dim, latent_dim, n_classes)

    out = jax.block_until_ready(cvae_forward(x, y, eps, params))
    ref = cvae_ref(x, y, eps, params)

    assert out.shape == (batch, input_dim), out.shape
    max_err = float(jnp.max(jnp.abs(out - ref)))
    assert jnp.allclose(out, ref, atol=2e-2, rtol=2e-2), f"mismatch vs reference: {max_err}"

    print("KERNEL_OK")
</pallas_src>

<mosaic_0001>
module attributes {stable_mosaic.version = 11 : i64} {
  func.func @cvae_kernel(%arg0: i32, %arg1: memref<16x16xf32, #tpu.memory_space<vmem>>, %arg2: memref<16x8xf32, #tpu.memory_space<vmem>>, %arg3: memref<16x8xf32, #tpu.memory_space<vmem>>, %arg4: memref<16x32xbf16, #tpu.memory_space<vmem>>, %arg5: memref<8x32xbf16, #tpu.memory_space<vmem>>, %arg6: memref<1x32xf32, #tpu.memory_space<vmem>>, %arg7: memref<32x16xbf16, #tpu.memory_space<vmem>>, %arg8: memref<1x16xf32, #tpu.memory_space<vmem>>, %arg9: memref<8x32xbf16, #tpu.memory_space<vmem>>, %arg10: memref<8x32xbf16, #tpu.memory_space<vmem>>, %arg11: memref<1x32xf32, #tpu.memory_space<vmem>>, %arg12: memref<32x16xbf16, #tpu.memory_space<vmem>>, %arg13: memref<1x16xf32, #tpu.memory_space<vmem>>, %arg14: memref<16x16xf32, #tpu.memory_space<vmem>>) attributes {dimension_semantics = [#tpu.dimension_semantics<parallel>], iteration_bounds = array<i64: 1>, scalar_prefetch = 0 : i64, scratch_operands = 0 : i64, tpu.core_type = #tpu.core_type<tc>, window_params = [{transform_indices = @transform_0, window_bounds = array<i64: 16, 16>}, {transform_indices = @transform_1, window_bounds = array<i64: 16, 8>}, {transform_indices = @transform_2, window_bounds = array<i64: 16, 8>}, {pipeline_mode = #tpu.pipeline_mode<synchronous>, transform_indices = @transform_3, window_bounds = array<i64: 16, 32>}, {pipeline_mode = #tpu.pipeline_mode<synchronous>, transform_indices = @transform_4, window_bounds = array<i64: 8, 32>}, {pipeline_mode = #tpu.pipeline_mode<synchronous>, transform_indices = @transform_5, window_bounds = array<i64: 1, 32>}, {pipeline_mode = #tpu.pipeline_mode<synchronous>, transform_indices = @transform_6, window_bounds = array<i64: 32, 16>}, {pipeline_mode = #tpu.pipeline_mode<synchronous>, transform_indices = @transform_7, window_bounds = array<i64: 1, 16>}, {pipeline_mode = #tpu.pipeline_mode<synchronous>, transform_indices = @transform_8, window_bounds = array<i64: 8, 32>}, {pipeline_mode = #tpu.pipeline_mode<synchronous>, transform_indices = @transform_9, window_bounds = array<i64: 8, 32>}, {pipeline_mode = #tpu.pipeline_mode<synchronous>, transform_indices = @transform_10, window_bounds = array<i64: 1, 32>}, {pipeline_mode = #tpu.pipeline_mode<synchronous>, transform_indices = @transform_11, window_bounds = array<i64: 32, 16>}, {pipeline_mode = #tpu.pipeline_mode<synchronous>, transform_indices = @transform_12, window_bounds = array<i64: 1, 16>}, {transform_indices = @transform_13, window_bounds = array<i64: 16, 16>}]} {
    %c0 = arith.constant 0 : index
    %c0_0 = arith.constant 0 : index
    %0 = vector.load %arg1[%c0, %c0_0] : memref<16x16xf32, #tpu.memory_space<vmem>>, vector<16x16xf32>
    %1 = arith.truncf %0 : vector<16x16xf32> to vector<16x16xbf16>
    %c0_1 = arith.constant 0 : index
    %c0_2 = arith.constant 0 : index
    %2 = vector.load %arg2[%c0_1, %c0_2] : memref<16x8xf32, #tpu.memory_space<vmem>>, vector<16x8xf32>
    %3 = arith.truncf %2 : vector<16x8xf32> to vector<16x8xbf16>
    %c0_3 = arith.constant 0 : index
    %c0_4 = arith.constant 0 : index
    %4 = vector.load %arg4[%c0_3, %c0_4] : memref<16x32xbf16, #tpu.memory_space<vmem>>, vector<16x32xbf16>
    %cst = arith.constant dense<0.000000e+00> : vector<16x32xf32>
    %5 = tpu.matmul %1, %4, %cst {dimension_numbers = #tpu.dot_dimension_numbers<[1], [0], [0], [1], [0, 0, 1, 1], [], []>} : vector<16x16xbf16>, vector<16x32xbf16>, vector<16x32xf32> -> vector<16x32xf32>
    %c0_5 = arith.constant 0 : index
    %c0_6 = arith.constant 0 : index
    %6 = vector.load %arg5[%c0_5, %c0_6] : memref<8x32xbf16, #tpu.memory_space<vmem>>, vector<8x32xbf16>
    %cst_7 = arith.constant dense<0.000000e+00> : vector<16x32xf32>
    %7 = tpu.matmul %3, %6, %cst_7 {dimension_numbers = #tpu.dot_dimension_numbers<[1], [0], [0], [1], [0, 0, 1, 1], [], []>} : vector<16x8xbf16>, vector<8x32xbf16>, vector<16x32xf32> -> vector<16x32xf32>
    %8 = arith.addf %5, %7 : vector<16x32xf32>
    %c0_8 = arith.constant 0 : index
    %c0_9 = arith.constant 0 : index
    %9 = vector.load %arg6[%c0_8, %c0_9] : memref<1x32xf32, #tpu.memory_space<vmem>>, vector<1x32xf32>
    %10 = vector.broadcast %9 : vector<1x32xf32> to vector<16x32xf32>
    %11 = arith.addf %8, %10 : vector<16x32xf32>
    %cst_10 = arith.constant 0.000000e+00 : f32
    %12 = vector.broadcast %cst_10 : f32 to vector<16x32xf32>
    %13 = arith.maximumf %11, %12 : vector<16x32xf32>
    %14 = arith.truncf %13 : vector<16x32xf32> to vector<16x32xbf16>
    %c0_11 = arith.constant 0 : index
    %c0_12 = arith.constant 0 : index
    %15 = vector.load %arg7[%c0_11, %c0_12] : memref<32x16xbf16, #tpu.memory_space<vmem>>, vector<32x16xbf16>
    %cst_13 = arith.constant dense<0.000000e+00> : vector<16x16xf32>
    %16 = tpu.matmul %14, %15, %cst_13 {dimension_numbers = #tpu.dot_dimension_numbers<[1], [0], [0], [1], [0, 0, 1, 1], [], []>} : vector<16x32xbf16>, vector<32x16xbf16>, vector<16x16xf32> -> vector<16x16xf32>
    %c0_14 = arith.constant 0 : index
    %c0_15 = arith.constant 0 : index
    %17 = vector.load %arg8[%c0_14, %c0_15] : memref<1x16xf32, #tpu.memory_space<vmem>>, vector<1x16xf32>
    %18 = vector.broadcast %17 : vector<1x16xf32> to vector<16x16xf32>
    %19 = arith.addf %16, %18 : vector<16x16xf32>
    %20 = vector.extract_strided_slice %19 {offsets = [0, 0], sizes = [16, 8], strides = [1, 1]} : vector<16x16xf32> to vector<16x8xf32>
    %21 = vector.extract_strided_slice %19 {offsets = [0, 8], sizes = [16, 8], strides = [1, 1]} : vector<16x16xf32> to vector<16x8xf32>
    %22 = math.exp %21 : vector<16x8xf32>
    %c0_16 = arith.constant 0 : index
    %c0_17 = arith.constant 0 : index
    %23 = vector.load %arg3[%c0_16, %c0_17] : memref<16x8xf32, #tpu.memory_space<vmem>>, vector<16x8xf32>
    %24 = arith.mulf %22, %23 : vector<16x8xf32>
    %25 = arith.addf %20, %24 : vector<16x8xf32>
    %26 = arith.truncf %25 : vector<16x8xf32> to vector<16x8xbf16>
    %c0_18 = arith.constant 0 : index
    %c0_19 = arith.constant 0 : index
    %27 = vector.load %arg9[%c0_18, %c0_19] : memref<8x32xbf16, #tpu.memory_space<vmem>>, vector<8x32xbf16>
    %cst_20 = arith.constant dense<0.000000e+00> : vector<16x32xf32>
    %28 = tpu.matmul %26, %27, %cst_20 {dimension_numbers = #tpu.dot_dimension_numbers<[1], [0], [0], [1], [0, 0, 1, 1], [], []>} : vector<16x8xbf16>, vector<8x32xbf16>, vector<16x32xf32> -> vector<16x32xf32>
    %c0_21 = arith.constant 0 : index
    %c0_22 = arith.constant 0 : index
    %29 = vector.load %arg10[%c0_21, %c0_22] : memref<8x32xbf16, #tpu.memory_space<vmem>>, vector<8x32xbf16>
    %cst_23 = arith.constant dense<0.000000e+00> : vector<16x32xf32>
    %30 = tpu.matmul %3, %29, %cst_23 {dimension_numbers = #tpu.dot_dimension_numbers<[1], [0], [0], [1], [0, 0, 1, 1], [], []>} : vector<16x8xbf16>, vector<8x32xbf16>, vector<16x32xf32> -> vector<16x32xf32>
    %31 = arith.addf %28, %30 : vector<16x32xf32>
    %c0_24 = arith.constant 0 : index
    %c0_25 = arith.constant 0 : index
    %32 = vector.load %arg11[%c0_24, %c0_25] : memref<1x32xf32, #tpu.memory_space<vmem>>, vector<1x32xf32>
    %33 = vector.broadcast %32 : vector<1x32xf32> to vector<16x32xf32>
    %34 = arith.addf %31, %33 : vector<16x32xf32>
    %cst_26 = arith.constant 0.000000e+00 : f32
    %35 = vector.broadcast %cst_26 : f32 to vector<16x32xf32>
    %36 = arith.maximumf %34, %35 : vector<16x32xf32>
    %37 = arith.truncf %36 : vector<16x32xf32> to vector<16x32xbf16>
    %c0_27 = arith.constant 0 : index
    %c0_28 = arith.constant 0 : index
    %38 = vector.load %arg12[%c0_27, %c0_28] : memref<32x16xbf16, #tpu.memory_space<vmem>>, vector<32x16xbf16>
    %cst_29 = arith.constant dense<0.000000e+00> : vector<16x16xf32>
    %39 = tpu.matmul %37, %38, %cst_29 {dimension_numbers = #tpu.dot_dimension_numbers<[1], [0], [0], [1], [0, 0, 1, 1], [], []>} : vector<16x32xbf16>, vector<32x16xbf16>, vector<16x16xf32> -> vector<16x16xf32>
    %c0_30 = arith.constant 0 : index
    %c0_31 = arith.constant 0 : index
    %40 = vector.load %arg13[%c0_30, %c0_31] : memref<1x16xf32, #tpu.memory_space<vmem>>, vector<1x16xf32>
    %41 = vector.broadcast %40 : vector<1x16xf32> to vector<16x16xf32>
    %42 = arith.addf %39, %41 : vector<16x16xf32>
    %43 = arith.negf %42 : vector<16x16xf32>
    %44 = math.exp %43 : vector<16x16xf32>
    %cst_32 = arith.constant 1.000000e+00 : f32
    %45 = vector.broadcast %cst_32 : f32 to vector<16x16xf32>
    %46 = arith.addf %45, %44 : vector<16x16xf32>
    %47 = arith.divf %45, %46 : vector<16x16xf32>
    %c0_33 = arith.constant 0 : index
    %c0_34 = arith.constant 0 : index
    %48 = vector.load %arg14[%c0_33, %c0_34] : memref<16x16xf32, #tpu.memory_space<vmem>>, vector<16x16xf32>
    tpu.vector_store %arg14[%c0_33, %c0_34], %47 {strides = array<i32>} : memref<16x16xf32, #tpu.memory_space<vmem>>, vector<16x16xf32>,
    return
  }
  func.func @transform_0(%arg0: i32) -> (i32, i32) {
    %c0_i32 = arith.constant 0 : i32
    %c0_i32_0 = arith.constant 0 : i32
    return %arg0, %c0_i32 : i32, i32
  }
  func.func @transform_1(%arg0: i32) -> (i32, i32) {
    %c0_i32 = arith.constant 0 : i32
    %c0_i32_0 = arith.constant 0 : i32
    return %arg0, %c0_i32 : i32, i32
  }
  func.func @transform_2(%arg0: i32) -> (i32, i32) {
    %c0_i32 = arith.constant 0 : i32
    %c0_i32_0 = arith.constant 0 : i32
    return %arg0, %c0_i32 : i32, i32
  }
  func.func @transform_3(%arg0: i32) -> (i32, i32) {
    %c0_i32 = arith.constant 0 : i32
    %c0_i32_0 = arith.constant 0 : i32
    %c0_i32_1 = arith.constant 0 : i32
    return %c0_i32, %c0_i32_0 : i32, i32
  }
  func.func @transform_4(%arg0: i32) -> (i32, i32) {
    %c0_i32 = arith.constant 0 : i32
    %c0_i32_0 = arith.constant 0 : i32
    %c0_i32_1 = arith.constant 0 : i32
    return %c0_i32, %c0_i32_0 : i32, i32
  }
  func.func @transform_5(%arg0: i32) -> (i32, i32) {
    %c0_i32 = arith.constant 0 : i32
    %c0_i32_0 = arith.constant 0 : i32
    %c0_i32_1 = arith.constant 0 : i32
    return %c0_i32, %c0_i32_0 : i32, i32
  }
  func.func @transform_6(%arg0: i32) -> (i32, i32) {
    %c0_i32 = arith.constant 0 : i32
    %c0_i32_0 = arith.constant 0 : i32
    %c0_i32_1 = arith.constant 0 : i32
    return %c0_i32, %c0_i32_0 : i32, i32
  }
  func.func @transform_7(%arg0: i32) -> (i32, i32) {
    %c0_i32 = arith.constant 0 : i32
    %c0_i32_0 = arith.constant 0 : i32
    %c0_i32_1 = arith.constant 0 : i32
    return %c0_i32, %c0_i32_0 : i32, i32
  }
  func.func @transform_8(%arg0: i32) -> (i32, i32) {
    %c0_i32 = arith.constant 0 : i32
    %c0_i32_0 = arith.constant 0 : i32
    %c0_i32_1 = arith.constant 0 : i32
    return %c0_i32, %c0_i32_0 : i32, i32
  }
  func.func @transform_9(%arg0: i32) -> (i32, i32) {
    %c0_i32 = arith.constant 0 : i32
    %c0_i32_0 = arith.constant 0 : i32
    %c0_i32_1 = arith.constant 0 : i32
    return %c0_i32, %c0_i32_0 : i32, i32
  }
  func.func @transform_10(%arg0: i32) -> (i32, i32) {
    %c0_i32 = arith.constant 0 : i32
    %c0_i32_0 = arith.constant 0 : i32
    %c0_i32_1 = arith.constant 0 : i32
    return %c0_i32, %c0_i32_0 : i32, i32
  }
  func.func @transform_11(%arg0: i32) -> (i32, i32) {
    %c0_i32 = arith.constant 0 : i32
    %c0_i32_0 = arith.constant 0 : i32
    %c0_i32_1 = arith.constant 0 : i32
    return %c0_i32, %c0_i32_0 : i32, i32
  }
  func.func @transform_12(%arg0: i32) -> (i32, i32) {
    %c0_i32 = arith.constant 0 : i32
    %c0_i32_0 = arith.constant 0 : i32
    %c0_i32_1 = arith.constant 0 : i32
    return %c0_i32, %c0_i32_0 : i32, i32
  }
  func.func @transform_13(%arg0: i32) -> (i32, i32) {
    %c0_i32 = arith.constant 0 : i32
    %c0_i32_0 = arith.constant 0 : i32
    return %arg0, %c0_i32 : i32, i32
  }
}

</mosaic_0001>

<bundles_post_ra>
// kernel: tpu_custom_call.1
= control target key start
LH: loop header
LB: loop body
LE: loop exit
PB: predicated region body
PF: predicated region fallthrough
CT: control target
= control target key end

     0   :  { %vm59_vm0 = vcmask 1043456   ;;  %v582_v1 = vmov 0.0   ;;  %vm583_vm1 = vmmov 0   ;;  %vm55_vm2 = vcmask 64512   ;;  %s758_s0 = inlined_call_operand.vmem [shape: f32[16,16], index: 0, kind: input, shape index: {}]   ;;  %s759_s1 = inlined_call_operand.vmem [shape: f32[16,8], index: 1, kind: input, shape index: {}]   ;;  %s760_s2 = inlined_call_operand.vmem [shape: f32[16,8], index: 2, kind: input, shape index: {}]   ;;  %s761_s3 = inlined_call_operand.vmem [shape: bf16[16,32], index: 3, kind: input, shape index: {}]   ;;  %s762_s4 = inlined_call_operand.vmem [shape: bf16[8,32], index: 4, kind: input, shape index: {}]   ;;  %s763_s5 = inlined_call_operand.vmem [shape: f32[1,32], index: 5, kind: input, shape index: {}]   ;;  %s764_s6 = inlined_call_operand.vmem [shape: bf16[32,16], index: 6, kind: input, shape index: {}]   ;;  %s765_s7 = inlined_call_operand.vmem [shape: f32[1,16], index: 7, kind: input, shape index: {}]   ;;  %s766_s8 = inlined_call_operand.vmem [shape: bf16[8,32], index: 8, kind: input, shape index: {}]   ;;  %s767_s9 = inlined_call_operand.vmem [shape: bf16[8,32], index: 9, kind: input, shape index: {}]   ;;  %s768_s10 = inlined_call_operand.vmem [shape: f32[1,32], index: 10, kind: input, shape index: {}]   ;;  %s769_s11 = inlined_call_operand.vmem [shape: bf16[32,16], index: 11, kind: input, shape index: {}]   ;;  %s770_s12 = inlined_call_operand.vmem [shape: f32[1,16], index: 12, kind: input, shape index: {}]   ;;  %s771_s13 = inlined_call_operand.hbm [shape: f32[16,16], index: 13, kind: output, shape index: {}]  }
   0x1   :  { %v54_v0 = vld [vmem:[%s762_s4] sm:$0xf]  ;;  %495 = vmatprep.subr.bf16.mxu0 %v582_v1  ;;  %501 = vmatprep.subr.bf16.mxu1 %v582_v1  ;;  %v50_v5 = vld [vmem:[%s759_s1 + $0x8] sm:$0xff]  ;;  %vm110_vm3 = vcmask 130048  }
   0x2   :  { %v61_v2 = vsel %vm59_vm0, %v54_v0, 0  ;;  %v541_v3 = vld [vmem:[%s761_s3] sm:$0xff]   ;;  %497 = vmatprep.mubr.msk.bf16.mxu0 %vm583_vm1, %v582_v1  ;;  %v47_v7 = vld [vmem:[%s758_s0 + $0x8] sm:$0xff]  ;;  %503 = vmatprep.mubr.msk.bf16.mxu1 %vm583_vm1, %v582_v1 }
   0x3   :  { %v49_v4 = vld [vmem:[%s759_s1] sm:$0xff]  ;;  %496 = vmatpush3.bf16.msra.mxu0 %v61_v2  ;;  %502 = vmatpush3.bf16.msra.mxu1 %v541_v3 }
   0x4   :  { %v46_v6 = vld [vmem:[%s758_s0] sm:$0xff]  ;;  %v51_v8 = vpack.c.bf16 %v50_v5, %v49_v4  ;;  %507 = vmatprep.subr.bf16.mxu0 %v582_v1  ;;  %515 = vmatprep.subr.bf16.mxu1 %v582_v1 }
   0x5   :  { %v48_v9 = vpack.c.bf16 %v47_v7, %v46_v6 }
   0x6   :  { %498 = vmatmul.mubr.msk.bf16.vlgmr.msra.gmra.mrb[0].mxu0 %vm55_vm2, %v51_v8 }
   0x7   :  { %18 = vsyncpa [#allocation3], 0  ;;  %504 = vmatmul.mubr.msk.bf16.vlgmr.msra.gmra.mrb[0].mxu1 %vm110_vm3, %v48_v9  ;;  %511 = vmatprep.mubr.msk.bf16.mxu0 %vm583_vm1, %v582_v1  ;;  %v542_v10 = vld [vmem:[%s764_s6] sm:$0xff]   ;;  %v543_v11 = vld [vmem:[%s764_s6 + $0x8] sm:$0xff]   ;;  %s584_s22 = smov 8   ;;  %vm190_vm4 = vcmask 261120  }
   0x8   :  { %517 = vmatprep.mubr.msk.bf16.mxu1 %vm583_vm1, %v582_v1  ;;  %508 = vmatpush3.bf16.msra.mxu0 %v542_v10  ;;  %v239_v12 = vld [vmem:[%s760_s2] sm:$0xff]  ;;  %v240_v13 = vld [vmem:[%s760_s2 + $0x8] sm:$0xff] }
   0x9   :  { %509 = vmatprep.subr.bf16.mxu0 %v582_v1  ;;  %243 = vrot.lane.b32.xlu0 %v239_v12, %s584_s22  ;;  %v467_v17 = vld [vmem:[%s763_s5] ss:$0 sm:$0xff]  ;;  %v545_v59 = vld [vmem:[%s769_s11 + $0x8] sm:$0xff]  }
   0xa   :  { %v468_v30 = vld [vmem:[%s765_s7] ss:$0 sm:$0xff]  ;;  %s585_s7 = smov 120  }
   0xb   :  { %v263_v39 = vld [vmem:[%s767_s9] sm:$0xf] }
   0xc   :  { %510 = vmatpush3.bf16.msra.mxu0 %v543_v11  ;;  %v262_v40 = vld [vmem:[%s766_s8] sm:$0xf]  ;;  %v265_v41 = vsel %vm59_vm0, %v263_v39, 0 }
   0xd   :  { %521 = vmatprep.subr.bf16.mxu0 %v582_v1  ;;  %245 = vrot.lane.b32.xlu0 %v240_v13, %s584_s22  ;;  %v312_v42 = vsel %vm59_vm0, %v262_v40, 0  ;;  %v544_v58 = vld [vmem:[%s769_s11] sm:$0xff]  }
   0xe   :  { %516 = vmatpush3.bf16.msra.mxu1 %v265_v41  ;;  %v474_v61 = vld [vmem:[%s768_s10] ss:$0 sm:$0xff]  ;;  %s586_s10 = smov [#allocation2]  }
   0xf   :  { %527 = vmatprep.subr.bf16.mxu1 %v582_v1  ;;  %s453_s17 = sshll.u32 %s586_s10, 4  ;;  %s454_s17 = int_to_ptr.vmem [resolvable:$true] %s453_s17 }
  0x10   :  { %p563_p1 = scmp.lt.s32.totalorder %s454_s17, %s454_s17 }
  0x11   :  { %518 = vmatmul.mubr.msk.bf16.vlgmr.msra.gmra.mrb[4].mxu1 %vm55_vm2, %v51_v8  ;;  %v475_v8 = vld [vmem:[%s770_s12] ss:$0 sm:$0xff]  ;;  %s558_s12 = scalar_lea.vmem %s454_s17, 256 }
  0x12   :  { %531 = vmatprep.mubr.msk.bf16.mxu1 %vm583_vm1, %v582_v1  ;;  %528 = vmatpush3.bf16.msra.mxu1 %v544_v58  ;;  %p559_p0 = scmp.ne.s32.totalorder %s454_s17, %s558_s12  ;;  %p564_p2 = scmp.lt.s32.totalorder %s558_s12, %s558_s12 }
  0x13   :  { %529 = vmatprep.subr.bf16.mxu1 %v582_v1 }
  0x14   :  { %p565_p3 = por %p564_p2, %p563_p1 }
  0x16   :  { %530 = vmatpush3.bf16.msra.mxu1 %v545_v59  ;;  %p566_p4 = pnand %p565_p3, %p559_p0 }
  0x7b   :  { %v244_v43 = vpop.permute.xlu0 %243 }
  0x7f   :  { %v246_v47 = vpop.permute.xlu0 %245 }
  0xd9   :  { %v97_v14 = vpop.f32.mrb[0].mxu0 }
  0xda   :  { %v499_v15 = vpop.f32.mrb[1].mxu0  ;;  %v148_v16 = vpop.f32.mrb[0].mxu1 }
  0xdb   :  { %v149_v18 = vadd.f32 %v148_v16, %v97_v14  ;;  %v100_v19 = vpop.f32.mrb[2].mxu0  ;;  %v505_v20 = vpop.f32.mrb[1].mxu1 }
  0xdc   :  { %v500_v21 = vpop.f32.mrb[3].mxu0  ;;  %v151_v22 = vpop.f32.mrb[2].mxu1 }
  0xdd   :  { %v162_v23 = vadd.f32 %v467_v17, %v149_v18  ;;  %v152_v24 = vadd.f32 %v151_v22, %v100_v19  ;;  %v506_v25 = vpop.f32.mrb[3].mxu1 }
  0xdf   :  { %v163_v26 = vadd.f32 %v467_v17, %v152_v24  ;;  %v164_v27 = vmax.f32 %v162_v23, 0.0 }
  0xe1   :  { %v165_v28 = vmax.f32 %v163_v26, 0.0 }
  0xe3   :  { %v166_v29 = vpack.c.bf16 %v165_v28, %v164_v27 }
  0xe4   :  { %v301_v54 = vpop.f32.mrb[4].mxu1 }
  0xe5   :  { %512 = vmatmul.mubr.msk.bf16.vlgmr.msra.gmra.mrb[4].mxu0 %vm190_vm4, %v166_v29  ;;  %v519_v55 = vpop.f32.mrb[5].mxu1 }
  0xe6   :  { %523 = vmatprep.mubr.msk.bf16.mxu0 %vm583_vm1, %v582_v1  ;;  %522 = vmatpush3.bf16.msra.mxu0 %v312_v42  ;;  %v304_v56 = vpop.f32.mrb[6].mxu1 }
  0xe7   :  { %v520_v57 = vpop.f32.mrb[7].mxu1 }
 0x1b8   :  { %v228_v31 = vpop.f32.mrb[4].mxu0 }
 0x1b9   :  { %v229_v32 = vadd.f32 %v468_v30, %v228_v31  ;;  %v513_v33 = vpop.f32.mrb[5].mxu0 }
 0x1ba   :  { %v231_v34 = vpop.f32.mrb[6].mxu0 }
 0x1bb   :  { %v235_v35 = vmul.f32 1.442695, %v229_v32  ;;  %v232_v36 = vadd.f32 %v468_v30, %v231_v34  ;;  %v514_v37 = vpop.f32.mrb[7].mxu0 }
 0x1bd   :  { %546 = vpow2.f32 %v235_v35  ;;  %v237_v38 = vmul.f32 1.442695, %v232_v36 }
 0x1bf   :  { %548 = vpow2.f32 %v237_v38 }
 0x1c7   :  { %v547_v44 = vpop.eup %546 }
 0x1c8   :  { %v249_v45 = vmul.f32 %v547_v44, %v244_v43 }
 0x1c9   :  { %v549_v46 = vpop.eup %548 }
 0x1ca   :  { %253 = vrot.lane.b32.xlu1 %v249_v45, %s585_s7  ;;  %v250_v48 = vmul.f32 %v549_v46, %v246_v47 }
 0x1ce   :  { %255 = vrot.lane.b32.xlu1 %v250_v48, %s585_s7 }
 0x23c   :  { %v254_v49 = vpop.permute.xlu1 %253 }
 0x23d   :  { %v259_v51 = vadd.f32 %v254_v49, %v229_v32 }
 0x240   :  { %v256_v50 = vpop.permute.xlu1 %255 }
 0x241   :  { %v260_v52 = vadd.f32 %v256_v50, %v232_v36 }
 0x243   :  { %v261_v53 = vpack.c.bf16 %v260_v52, %v259_v51 }
 0x245   :  { %524 = vmatmul.mubr.msk.bf16.vlgmr.msra.gmra.mrb[8].mxu0 %vm55_vm2, %v261_v53 }
 0x318   :  { %v348_v60 = vpop.f32.mrb[8].mxu0 }
 0x319   :  { %v349_v62 = vadd.f32 %v348_v60, %v301_v54  ;;  %v525_v63 = vpop.f32.mrb[9].mxu0 }
 0x31a   :  { %v351_v0 = vpop.f32.mrb[10].mxu0 }
 0x31b   :  { %v362_v2 = vadd.f32 %v474_v61, %v349_v62  ;;  %v352_v3 = vadd.f32 %v351_v0, %v304_v56  ;;  %v526_v4 = vpop.f32.mrb[11].mxu0 }
 0x31d   :  { %v363_v5 = vadd.f32 %v474_v61, %v352_v3  ;;  %v364_v6 = vmax.f32 %v362_v2, 0.0 }
 0x31f   :  { %v365_v7 = vmax.f32 %v363_v5, 0.0 }
 0x321   :  { %v366_v1 = vpack.c.bf16 %v365_v7, %v364_v6 }
 0x323   :  { %532 = vmatmul.mubr.msk.bf16.vlgmr.msra.gmra.mrb[8].mxu1 %vm190_vm4, %v366_v1 }
 0x3f6   :  { %v427_v9 = vpop.f32.mrb[8].mxu1 }
 0x3f7   :  { %v428_v10 = vadd.f32 %v475_v8, %v427_v9  ;;  %v533_v11 = vpop.f32.mrb[9].mxu1 }
 0x3f8   :  { %v430_v12 = vpop.f32.mrb[10].mxu1 }
 0x3f9   :  { %v479_v13 = vmul.f32 -1.442695, %v428_v10  ;;  %v431_v14 = vadd.f32 %v475_v8, %v430_v12  ;;  %v534_v15 = vpop.f32.mrb[11].mxu1 }
 0x3fb   :  { %550 = vpow2.f32 %v479_v13  ;;  %v480_v16 = vmul.f32 -1.442695, %v431_v14 }
 0x3fd   :  { %552 = vpow2.f32 %v480_v16 }
 0x405   :  { %v551_v17 = vpop.eup %550 }
 0x406   :  { %v440_v18 = vadd.f32 1.0, %v551_v17 }
 0x407   :  { %v553_v19 = vpop.eup %552 }
 0x408   :  { %554 = vrcp.f32 %v440_v18  ;;  %v441_v20 = vadd.f32 1.0, %v553_v19 }
 0x40a   :  { %556 = vrcp.f32 %v441_v20 }
 0x412   :  { %v555_v21 = vpop.eup %554 }
 0x413   :  { %446 = vst.msk [vmem:[#allocation2] sm:$0xff] %vm110_vm3, %v555_v21 }
 0x414   :  { %v557_v22 = vpop.eup %556 }
 0x415   :  { %447 = vst.msk [vmem:[#allocation2 + $0x8] sm:$0xff] %vm110_vm3, %v557_v22 }
 0x416   :  { %569 = shalt.err (!%p566_p4)
}
 0x417   :  { %s570_s1 = scalar_lea.hbm %s771_s13, 256 }
 0x418   :  { %p571_p5 = scmp.ne.s32.totalorder %s771_s13, %s570_s1  ;;  %p574_p6 = scmp.lt.u32.totalorder %s570_s1, %s771_s13 }
 0x41a   :  { %p576_p7 = pnand %p574_p6, %p571_p5 }
 0x41c   :  { %579 = shalt.err (!%p576_p7)
}
 0x41d   :  { %s587_s23 = smov 128  }
 0x41e   :  { %459 = dma.vmem_to_hbm [thread:$0]  %s454_s17, 256, %s771_s13, [#allocation3], %s587_s23, %s587_s23, %s584_s22  }
 0x41f   :  { %580 = dma.done.wait [#allocation3], 256  }
 0x420   :  { %581 = vsyncadd [#allocation3], 4294967040 }
 0x421   :  { %463 = vsyncpa [#allocation3], 1 }

</bundles_post_ra>
